<compile_context>
chip_gen: v5e
topology: v5e:2x2
jax: 0.10.0
libtpu: 0.0.40
codegen_flags: <defaults>
</compile_context>

<pallas_src>
import jax
import jax.numpy as jnp
from jax.experimental import pallas as pl
from jax.experimental.pallas import tpu as pltpu


def _round_up(x, m):
    return ((x + m - 1) // m) * m


def _mlp_tail(x, tail_refs, num_layers):
    """Layers 2..N: ReLU(W @ x + b), f32 accumulation, bf16/f32 MXU inputs."""
    for l in range(num_layers - 1):
        w = tail_refs[2 * l][...]        # [out, in]   (PyTorch nn.Linear layout)
        b = tail_refs[2 * l + 1][...]    # [out, 1]    (f32)
        x = jnp.dot(w, x.astype(w.dtype), preferred_element_type=jnp.float32) + b
        x = jnp.maximum(x, 0.0)
    return x


def _make_streaming_kernel(num_layers):
    """kernel(u_t, i_t, w1u, w1i, b1, w2, b2, ..., out) — pre-gathered embeddings."""

    def kernel(u_ref, i_ref, *rest):
        out_ref = rest[-1]
        w1u_ref, w1i_ref, b1_ref = rest[0], rest[1], rest[2]
        tail = rest[3:-1]

        # Layer 1 with the concat folded into split weights.
        x = (jnp.dot(w1u_ref[...], u_ref[...], preferred_element_type=jnp.float32)
             + jnp.dot(w1i_ref[...], i_ref[...], preferred_element_type=jnp.float32)
             + b1_ref[...])                                   # [H1, TILE_B] f32
        x = jnp.maximum(x, 0.0)
        x = _mlp_tail(x, tail, num_layers)
        out_ref[...] = x.astype(out_ref.dtype)

    return kernel


def _make_fused_kernel(num_layers, user_num, item_num):
    """kernel(uid, iid, ue_t, ie_t, w1u, w1i, b1, ..., out) — tiny-table one-hot gather."""

    def kernel(uid_ref, iid_ref, ue_ref, ie_ref, *rest):
        out_ref = rest[-1]
        w1u_ref, w1i_ref, b1_ref = rest[0], rest[1], rest[2]
        tail = rest[3:-1]

        uid = uid_ref[...]                                    # [1, TILE_B] int32
        iid = iid_ref[...]

        # Iota built as (U,1)/(I,1), broadcast against the [1, TILE_B] ids
        # (cheaper VPU pass than materializing a (U, TILE_B) iota).
        # One-hot built directly in the compute dtype (0/1 exact in bf16).
        # NOTE (v5e only): an int8 one-hot would use the int MXU path; not
        # done here because v7x's MXU has no int path.
        u_oh = (jax.lax.broadcasted_iota(jnp.int32, (user_num, 1), 0)
                == uid).astype(ue_ref.dtype)                  # [U, TILE_B]
        i_oh = (jax.lax.broadcasted_iota(jnp.int32, (item_num, 1), 0)
                == iid).astype(ie_ref.dtype)                  # [I, TILE_B]

        u_t = jnp.dot(ue_ref[...], u_oh, preferred_element_type=jnp.float32)
        i_t = jnp.dot(ie_ref[...], i_oh, preferred_element_type=jnp.float32)

        x = (jnp.dot(w1u_ref[...], u_t.astype(w1u_ref.dtype),
                     preferred_element_type=jnp.float32)
             + jnp.dot(w1i_ref[...], i_t.astype(w1i_ref.dtype),
                       preferred_element_type=jnp.float32)
             + b1_ref[...])
        x = jnp.maximum(x, 0.0)
        x = _mlp_tail(x, tail, num_layers)
        out_ref[...] = x.astype(out_ref.dtype)

    return kernel


def ncf_mlp_forward(user_id, item_id, user_embed, item_embed, weights, biases,
                    *, tile_b=1024, compute_dtype=jnp.bfloat16, fuse_gather=None,
                    feature_major_output=False):
    """Fused NCF-MLP forward.

    user_id, item_id: [B] int
    user_embed: [U, E], item_embed: [I, E]   (PyTorch nn.Embedding layout)
    weights:    list of [out, in]            (PyTorch nn.Linear layout)
    biases:     list of [out]
    Returns [B, out_dim] float32 (or [out_dim, B] if feature_major_output).
    """
    B = int(user_id.shape[0])
    U, E = map(int, user_embed.shape)
    I_, E2 = map(int, item_embed.shape)
    assert E2 == E, "user/item embeddings must share embed_dim"
    num_layers = len(weights)
    assert num_layers >= 1
    assert int(weights[0].shape[1]) == 2 * E, "layers[0] must equal 2*embed_dim"
    out_dim = int(weights[-1].shape[0])
    dsize = jnp.dtype(compute_dtype).itemsize

    # ---- Batch tiling: lane-dense, >=2 grid steps when batch allows (v7x megacore).
    B128 = _round_up(max(B, 1), 128)
    TILE_B = min(_round_up(int(tile_b), 128), B128)
    if B128 // TILE_B < 2 and B128 >= 256:
        TILE_B = _round_up(B128 // 2, 128)
    B_pad = _round_up(B128, TILE_B)
    grid = (B_pad // TILE_B,)

    # ---- Parameters (feature-major activations, PyTorch [out,in] weight layout).
    w1 = weights[0].astype(compute_dtype)
    params = [w1[:, :E], w1[:, E:], biases[0].reshape(-1, 1).astype(jnp.float32)]
    for w, b in zip(weights[1:], biases[1:]):
        params.append(w.astype(compute_dtype))
        params.append(b.reshape(-1, 1).astype(jnp.float32))
    param_bytes = sum(int(p.size) * p.dtype.itemsize for p in params)

    table_bytes = (U + I_) * E * dsize
    if fuse_gather is None:
        # Keep the one-hot MXU gather only for tiny, VMEM-friendly tables.
        fuse_gather = table_bytes <= (2 << 20)

    def _resident(arr):
        # Constant index_map -> block stays VMEM-resident across grid steps.
        return pl.BlockSpec(arr.shape, lambda *_: (0,) * arr.ndim)

    max_width = max(int(w.shape[0]) for w in weights)
    act_bytes = 4 * max_width * TILE_B * 4  # slack for f32 activation slabs

    if fuse_gather:
        def _prep_ids(ids):
            ids = ids.astype(jnp.int32).reshape(1, B)
            if B_pad != B:
                ids = jnp.pad(ids, ((0, 0), (0, B_pad - B)))  # pad with id 0 (valid)
            return ids

        ue_t = user_embed.T.astype(compute_dtype)              # [E, U]
        ie_t = item_embed.T.astype(compute_dtype)              # [E, I]
        stream_inputs = (_prep_ids(user_id), _prep_ids(item_id))
        resident_inputs = (ue_t, ie_t)
        stream_specs = [pl.BlockSpec((1, TILE_B), lambda i: (0, i))] * 2
        kernel = _make_fused_kernel(num_layers, U, I_)
        gather_flops = 2 * B_pad * (U + I_) * E
        gather_bytes = table_bytes + 2 * B_pad * 4
        vmem_need = (param_bytes + table_bytes
                     + 2 * 2 * TILE_B * 4 + 2 * out_dim * TILE_B * 4 + act_bytes)
    else:
        # Pre-gathered embedding activations (XLA gather), streamed feature-major.
        def _prep_vec(tab, ids):
            v = tab[ids.astype(jnp.int32)].astype(compute_dtype).T  # [E, B]
            if B_pad != B:
                v = jnp.pad(v, ((0, 0), (0, B_pad - B)))
            return v

        stream_inputs = (_prep_vec(user_embed, user_id),
                         _prep_vec(item_embed, item_id))
        resident_inputs = ()
        stream_specs = [pl.BlockSpec((E, TILE_B), lambda i: (0, i))] * 2
        kernel = _make_streaming_kernel(num_layers)
        gather_flops = 0
        gather_bytes = 2 * B_pad * E * dsize
        vmem_need = (param_bytes + 2 * 2 * E * TILE_B * dsize
                     + 2 * out_dim * TILE_B * 4 + act_bytes)
        # TODO(synk): for huge tables one could instead DMA-row-gather inside the
        # kernel via PrefetchScalarGridSpec ids + memory_space=pl.ANY tables.

    in_specs = (stream_specs
                + [_resident(a) for a in resident_inputs]
                + [_resident(p) for p in params])
    out_specs = pl.BlockSpec((out_dim, TILE_B), lambda i: (0, i))

    # Explicit VMEM budget: raise the default scoped limit (16/32 MiB on
    # v5e/v6e) but cap at 64 MiB so the same budget is valid on v7x.
    vmem_limit = int(min(max(2 * vmem_need + (8 << 20), 32 << 20), 64 << 20))

    mlp_flops = 2 * B_pad * sum(int(w.shape[0]) * int(w.shape[1]) for w in weights)
    bytes_accessed = param_bytes + gather_bytes + B_pad * out_dim * 4

    out_t = pl.pallas_call(
        kernel,
        out_shape=jax.ShapeDtypeStruct((out_dim, B_pad), jnp.float32),
        grid=grid,
        in_specs=in_specs,
        out_specs=out_specs,
        compiler_params=pltpu.CompilerParams(
            dimension_semantics=("parallel",),
            vmem_limit_bytes=vmem_limit),
        cost_estimate=pl.CostEstimate(
            flops=int(mlp_flops + gather_flops), transcendentals=0,
            bytes_accessed=int(bytes_accessed)),
    )(*stream_inputs, *resident_inputs, *params)

    out_t = out_t[:, :B]
    if feature_major_output:
        return out_t                      # [out_dim, B] — skips the epilogue transpose
    return out_t.T                        # [B, out_dim] — matches the PyTorch module


def init_params(key, user_num, item_num, embed_dim, layers):
    """Deterministic init mirroring MLP._init_weight() (PyTorch layouts)."""
    keys = jax.random.split(key, 2 + len(layers) - 1)
    user_embed = 0.01 * jax.random.normal(keys[0], (user_num, embed_dim), jnp.float32)
    item_embed = 0.01 * jax.random.normal(keys[1], (item_num, embed_dim), jnp.float32)
    weights, biases = [], []
    for i, (in_size, out_size) in enumerate(zip(layers[:-1], layers[1:])):
        std = (2.0 / (in_size + out_size)) ** 0.5      # Xavier normal
        w = std * jax.random.normal(keys[2 + i], (out_size, in_size), jnp.float32)
        weights.append(w)
        biases.append(jnp.zeros((out_size,), jnp.float32))
    return user_embed, item_embed, weights, biases


def reference_forward(user_id, item_id, user_embed, item_embed, weights, biases):
    """Pure-JAX f32 reference matching the PyTorch module."""
    x = jnp.concatenate([user_embed[user_id], item_embed[item_id]], axis=-1)
    for w, b in zip(weights, biases):
        x = jnp.maximum(x @ w.T + b, 0.0)
    return x


if __name__ == "__main__":
    # Small, forward-consistent shapes: layers[0] == 2 * embed_dim.
    user_num, item_num = 10, 20
    embed_dim = 16
    layers = [32, 64, 32, 16]
    batch = 8

    key = jax.random.PRNGKey(0)
    pkey, ukey, ikey = jax.random.split(key, 3)
    user_embed, item_embed, weights, biases = init_params(
        pkey, user_num, item_num, embed_dim, layers)
    user_id = jax.random.randint(ukey, (batch,), 0, user_num, dtype=jnp.int32)
    item_id = jax.random.randint(ikey, (batch,), 0, item_num, dtype=jnp.int32)

    ref = reference_forward(user_id, item_id, user_embed, item_embed, weights, biases)

    # 1) f32, streaming (pre-gathered) path — the scalable default structure.
    out_stream = jax.block_until_ready(ncf_mlp_forward(
        user_id, item_id, user_embed, item_embed, weights, biases,
        compute_dtype=jnp.float32, fuse_gather=False))
    assert out_stream.shape == (batch, layers[-1])
    assert jnp.allclose(out_stream, ref, atol=2e-5, rtol=2e-3), \
        float(jnp.max(jnp.abs(out_stream - ref)))

    # 2) f32, fused one-hot gather path (tiny tables only).
    out_fused = jax.block_until_ready(ncf_mlp_forward(
        user_id, item_id, user_embed, item_embed, weights, biases,
        compute_dtype=jnp.float32, fuse_gather=True))
    assert jnp.allclose(out_fused, ref, atol=2e-5, rtol=2e-3), \
        float(jnp.max(jnp.abs(out_fused - ref)))

    # 3) Default config (bf16 params/activations, f32 accumulation): bf16 param
    #    rounding drifts from the f32 reference, so use a looser tolerance.
    out_bf16 = jax.block_until_ready(ncf_mlp_forward(
        user_id, item_id, user_embed, item_embed, weights, biases))
    assert out_bf16.shape == (batch, layers[-1])
    assert jnp.allclose(out_bf16, ref, atol=5e-4, rtol=5e-2), \
        float(jnp.max(jnp.abs(out_bf16 - ref)))

    print("KERNEL_OK")
</pallas_src>

<mosaic_0001>
module attributes {stable_mosaic.version = 11 : i64} {
  func.func @kernel(%arg0: i32, %arg1: memref<16x128xf32, #tpu.memory_space<vmem>>, %arg2: memref<16x128xf32, #tpu.memory_space<vmem>>, %arg3: memref<64x16xf32, #tpu.memory_space<vmem>>, %arg4: memref<64x16xf32, #tpu.memory_space<vmem>>, %arg5: memref<64x1xf32, #tpu.memory_space<vmem>>, %arg6: memref<32x64xf32, #tpu.memory_space<vmem>>, %arg7: memref<32x1xf32, #tpu.memory_space<vmem>>, %arg8: memref<16x32xf32, #tpu.memory_space<vmem>>, %arg9: memref<16x1xf32, #tpu.memory_space<vmem>>, %arg10: memref<16x128xf32, #tpu.memory_space<vmem>>) attributes {dimension_semantics = [#tpu.dimension_semantics<parallel>], iteration_bounds = array<i64: 1>, scalar_prefetch = 0 : i64, scratch_operands = 0 : i64, tpu.core_type = #tpu.core_type<tc>, window_params = [{transform_indices = @transform_0, window_bounds = array<i64: 16, 128>}, {transform_indices = @transform_1, window_bounds = array<i64: 16, 128>}, {pipeline_mode = #tpu.pipeline_mode<synchronous>, transform_indices = @transform_2, window_bounds = array<i64: 64, 16>}, {pipeline_mode = #tpu.pipeline_mode<synchronous>, transform_indices = @transform_3, window_bounds = array<i64: 64, 16>}, {pipeline_mode = #tpu.pipeline_mode<synchronous>, transform_indices = @transform_4, window_bounds = array<i64: 64, 1>}, {pipeline_mode = #tpu.pipeline_mode<synchronous>, transform_indices = @transform_5, window_bounds = array<i64: 32, 64>}, {pipeline_mode = #tpu.pipeline_mode<synchronous>, transform_indices = @transform_6, window_bounds = array<i64: 32, 1>}, {pipeline_mode = #tpu.pipeline_mode<synchronous>, transform_indices = @transform_7, window_bounds = array<i64: 16, 32>}, {pipeline_mode = #tpu.pipeline_mode<synchronous>, transform_indices = @transform_8, window_bounds = array<i64: 16, 1>}, {transform_indices = @transform_9, window_bounds = array<i64: 16, 128>}]} {
    %c0 = arith.constant 0 : index
    %c0_0 = arith.constant 0 : index
    %0 = vector.load %arg3[%c0, %c0_0] : memref<64x16xf32, #tpu.memory_space<vmem>>, vector<64x16xf32>
    %c0_1 = arith.constant 0 : index
    %c0_2 = arith.constant 0 : index
    %1 = vector.load %arg1[%c0_1, %c0_2] : memref<16x128xf32, #tpu.memory_space<vmem>>, vector<16x128xf32>
    %cst = arith.constant dense<0.000000e+00> : vector<64x128xf32>
    %2 = tpu.matmul %0, %1, %cst {dimension_numbers = #tpu.dot_dimension_numbers<[1], [0], [0], [1], [0, 0, 1, 1], [], []>} : vector<64x16xf32>, vector<16x128xf32>, vector<64x128xf32> -> vector<64x128xf32>
    %c0_3 = arith.constant 0 : index
    %c0_4 = arith.constant 0 : index
    %3 = vector.load %arg4[%c0_3, %c0_4] : memref<64x16xf32, #tpu.memory_space<vmem>>, vector<64x16xf32>
    %c0_5 = arith.constant 0 : index
    %c0_6 = arith.constant 0 : index
    %4 = vector.load %arg2[%c0_5, %c0_6] : memref<16x128xf32, #tpu.memory_space<vmem>>, vector<16x128xf32>
    %cst_7 = arith.constant dense<0.000000e+00> : vector<64x128xf32>
    %5 = tpu.matmul %3, %4, %cst_7 {dimension_numbers = #tpu.dot_dimension_numbers<[1], [0], [0], [1], [0, 0, 1, 1], [], []>} : vector<64x16xf32>, vector<16x128xf32>, vector<64x128xf32> -> vector<64x128xf32>
    %6 = arith.addf %2, %5 : vector<64x128xf32>
    %c0_8 = arith.constant 0 : index
    %c0_9 = arith.constant 0 : index
    %7 = vector.load %arg5[%c0_8, %c0_9] : memref<64x1xf32, #tpu.memory_space<vmem>>, vector<64x1xf32>
    %8 = vector.broadcast %7 : vector<64x1xf32> to vector<64x128xf32>
    %9 = arith.addf %6, %8 : vector<64x128xf32>
    %cst_10 = arith.constant 0.000000e+00 : f32
    %10 = vector.broadcast %cst_10 : f32 to vector<64x128xf32>
    %11 = arith.maximumf %9, %10 : vector<64x128xf32>
    %c0_11 = arith.constant 0 : index
    %c0_12 = arith.constant 0 : index
    %12 = vector.load %arg6[%c0_11, %c0_12] : memref<32x64xf32, #tpu.memory_space<vmem>>, vector<32x64xf32>
    %c0_13 = arith.constant 0 : index
    %c0_14 = arith.constant 0 : index
    %13 = vector.load %arg7[%c0_13, %c0_14] : memref<32x1xf32, #tpu.memory_space<vmem>>, vector<32x1xf32>
    %cst_15 = arith.constant dense<0.000000e+00> : vector<32x128xf32>
    %14 = tpu.matmul %12, %11, %cst_15 {dimension_numbers = #tpu.dot_dimension_numbers<[1], [0], [0], [1], [0, 0, 1, 1], [], []>} : vector<32x64xf32>, vector<64x128xf32>, vector<32x128xf32> -> vector<32x128xf32>
    %15 = vector.broadcast %13 : vector<32x1xf32> to vector<32x128xf32>
    %16 = arith.addf %14, %15 : vector<32x128xf32>
    %cst_16 = arith.constant 0.000000e+00 : f32
    %17 = vector.broadcast %cst_16 : f32 to vector<32x128xf32>
    %18 = arith.maximumf %16, %17 : vector<32x128xf32>
    %c0_17 = arith.constant 0 : index
    %c0_18 = arith.constant 0 : index
    %19 = vector.load %arg8[%c0_17, %c0_18] : memref<16x32xf32, #tpu.memory_space<vmem>>, vector<16x32xf32>
    %c0_19 = arith.constant 0 : index
    %c0_20 = arith.constant 0 : index
    %20 = vector.load %arg9[%c0_19, %c0_20] : memref<16x1xf32, #tpu.memory_space<vmem>>, vector<16x1xf32>
    %cst_21 = arith.constant dense<0.000000e+00> : vector<16x128xf32>
    %21 = tpu.matmul %19, %18, %cst_21 {dimension_numbers = #tpu.dot_dimension_numbers<[1], [0], [0], [1], [0, 0, 1, 1], [], []>} : vector<16x32xf32>, vector<32x128xf32>, vector<16x128xf32> -> vector<16x128xf32>
    %22 = vector.broadcast %20 : vector<16x1xf32> to vector<16x128xf32>
    %23 = arith.addf %21, %22 : vector<16x128xf32>
    %cst_22 = arith.constant 0.000000e+00 : f32
    %24 = vector.broadcast %cst_22 : f32 to vector<16x128xf32>
    %25 = arith.maximumf %23, %24 : vector<16x128xf32>
    %c0_23 = arith.constant 0 : index
    %c0_24 = arith.constant 0 : index
    %26 = vector.load %arg10[%c0_23, %c0_24] : memref<16x128xf32, #tpu.memory_space<vmem>>, vector<16x128xf32>
    tpu.vector_store %arg10[%c0_23, %c0_24], %25 {strides = array<i32>} : memref<16x128xf32, #tpu.memory_space<vmem>>, vector<16x128xf32>,
    return
  }
  func.func @transform_0(%arg0: i32) -> (i32, i32) {
    %c0_i32 = arith.constant 0 : i32
    %c0_i32_0 = arith.constant 0 : i32
    return %c0_i32, %arg0 : i32, i32
  }
  func.func @transform_1(%arg0: i32) -> (i32, i32) {
    %c0_i32 = arith.constant 0 : i32
    %c0_i32_0 = arith.constant 0 : i32
    return %c0_i32, %arg0 : i32, i32
  }
  func.func @transform_2(%arg0: i32) -> (i32, i32) {
    %c0_i32 = arith.constant 0 : i32
    %c0_i32_0 = arith.constant 0 : i32
    %c0_i32_1 = arith.constant 0 : i32
    return %c0_i32, %c0_i32_0 : i32, i32
  }
  func.func @transform_3(%arg0: i32) -> (i32, i32) {
    %c0_i32 = arith.constant 0 : i32
    %c0_i32_0 = arith.constant 0 : i32
    %c0_i32_1 = arith.constant 0 : i32
    return %c0_i32, %c0_i32_0 : i32, i32
  }
  func.func @transform_4(%arg0: i32) -> (i32, i32) {
    %c0_i32 = arith.constant 0 : i32
    %c0_i32_0 = arith.constant 0 : i32
    %c0_i32_1 = arith.constant 0 : i32
    return %c0_i32, %c0_i32_0 : i32, i32
  }
  func.func @transform_5(%arg0: i32) -> (i32, i32) {
    %c0_i32 = arith.constant 0 : i32
    %c0_i32_0 = arith.constant 0 : i32
    %c0_i32_1 = arith.constant 0 : i32
    return %c0_i32, %c0_i32_0 : i32, i32
  }
  func.func @transform_6(%arg0: i32) -> (i32, i32) {
    %c0_i32 = arith.constant 0 : i32
    %c0_i32_0 = arith.constant 0 : i32
    %c0_i32_1 = arith.constant 0 : i32
    return %c0_i32, %c0_i32_0 : i32, i32
  }
  func.func @transform_7(%arg0: i32) -> (i32, i32) {
    %c0_i32 = arith.constant 0 : i32
    %c0_i32_0 = arith.constant 0 : i32
    %c0_i32_1 = arith.constant 0 : i32
    return %c0_i32, %c0_i32_0 : i32, i32
  }
  func.func @transform_8(%arg0: i32) -> (i32, i32) {
    %c0_i32 = arith.constant 0 : i32
    %c0_i32_0 = arith.constant 0 : i32
    %c0_i32_1 = arith.constant 0 : i32
    return %c0_i32, %c0_i32_0 : i32, i32
  }
  func.func @transform_9(%arg0: i32) -> (i32, i32) {
    %c0_i32 = arith.constant 0 : i32
    %c0_i32_0 = arith.constant 0 : i32
    return %c0_i32, %arg0 : i32, i32
  }
}

</mosaic_0001>

<bundles_post_ra>
// kernel: tpu_custom_call.1
= control target key start
LH: loop header
LB: loop body
LE: loop exit
PB: predicated region body
PF: predicated region fallthrough
CT: control target
= control target key end

     0   :  { %v447_v3 = vmov 0   ;;  %vm53_vm0 = vcmask 130048   ;;  %s640_s0 = inlined_call_operand.vmem [shape: f32[16,128], index: 0, kind: input, shape index: {}]   ;;  %s641_s1 = inlined_call_operand.vmem [shape: f32[16,128], index: 1, kind: input, shape index: {}]   ;;  %s642_s2 = inlined_call_operand.vmem [shape: f32[64,16], index: 2, kind: input, shape index: {}]   ;;  %s643_s3 = inlined_call_operand.vmem [shape: f32[64,16], index: 3, kind: input, shape index: {}]   ;;  %s644_s4 = inlined_call_operand.vmem [shape: f32[64,1], index: 4, kind: input, shape index: {}]   ;;  %s645_s5 = inlined_call_operand.vmem [shape: f32[32,64], index: 5, kind: input, shape index: {}]   ;;  %s646_s6 = inlined_call_operand.vmem [shape: f32[32,1], index: 6, kind: input, shape index: {}]   ;;  %s647_s7 = inlined_call_operand.vmem [shape: f32[16,32], index: 7, kind: input, shape index: {}]   ;;  %s648_s8 = inlined_call_operand.vmem [shape: f32[16,1], index: 8, kind: input, shape index: {}]   ;;  %s649_s9 = inlined_call_operand.hbm [shape: f32[16,128], index: 9, kind: output, shape index: {}]  }
   0x1   :  { %v52_v0 = vld [vmem:[%s641_s1 + $0x8] sm:$0xff]  ;;  %419 = vset.pattern.permute.xlu1 %v447_v3  ;;  %v51_v4 = vld [vmem:[%s641_s1] sm:$0xff]  ;;  %v49_v7 = vld [vmem:[%s643_s3 + $0x30] sm:$0xff]  ;;  %418 = vset.pattern.permute.xlu0 %v447_v3 }
   0x2   :  { %v42_v1 = vld [vmem:[%s640_s0 + $0x8] sm:$0xff]  ;;  %92 = vmatpush.msra.mxu0 %v52_v0  ;;  %v41_v5 = vld [vmem:[%s640_s0] sm:$0xff]  ;;  %410 = vmatpush.msra.mxu3 %v52_v0  ;;  %v191_v9 = vld [vmem:[%s644_s4 + $0x38] sm:$0xff] }
   0x3   :  { %v189_v2 = vld [vmem:[%s644_s4 + $0x28] sm:$0xff]  ;;  %157 = vmatpush.msra.mxu1 %v42_v1  ;;  %v43_v6 = vld [vmem:[%s643_s3] sm:$0xff]  ;;  %229 = vperm.xlu0 %418, %v191_v9  }
   0x4   :  { %219 = vperm.xlu1 %419, %v189_v2   ;;  %93 = vmatpush.msra.mxu0 %v51_v4  ;;  %v33_v8 = vld [vmem:[%s642_s2] sm:$0xff] }
   0x5   :  { %411 = vmatpush.msra.mxu3 %v51_v4  ;;  %158 = vmatpush.msra.mxu1 %v41_v5  ;;  %v188_v10 = vld [vmem:[%s644_s4 + $0x20] sm:$0xff] }
   0x6   :  { %388 = vmatmul.msk.f32.vlgmr.msra.gmra.mxu0 %vm53_vm0, %v43_v6  ;;  %394 = vmatmul.msk.f32.vlgmr.msra.gmra.mxu3 %vm53_vm0, %v49_v7 }
   0x7   :  { %396 = vmatmul.msk.f32.vlgmr.msra.gmra.mxu1 %vm53_vm0, %v33_v8  ;;  %412 = vmatpush.msrb.mxu3 %v42_v1 }
   0x8   :  { %420 = vset.pattern.permute.xlu2 %v447_v3 }
   0x9   :  { %413 = vmatpush.msrb.mxu3 %v41_v5 }
   0xa   :  { %14 = vsyncpa [#allocation3], 0  ;;  %v44_v11 = vld [vmem:[%s643_s3 + $0x8] sm:$0xff]  ;;  %v50_v12 = vld [vmem:[%s643_s3 + $0x38] sm:$0xff]  ;;  %vm276_vm1 = vcmask 523264   ;;  %vm336_vm2 = vcmask 261120  }
   0xb   :  { %v34_v13 = vld [vmem:[%s642_s2 + $0x8] sm:$0xff]  ;;  %v190_v14 = vld [vmem:[%s644_s4 + $0x30] sm:$0xff]  ;;  %v187_v15 = vld [vmem:[%s644_s4 + $0x18] sm:$0xff]  ;;  %s448_s13 = smov [#allocation2]   ;;  %s376_s17 = sshll.u32 %s649_s9, 4  ;;  %s377_s17 = int_to_ptr.hbm [resolvable:$true] %s376_s17 }
   0xc   :  { %214 = vperm.xlu1 %419, %v188_v10   ;;  %224 = vperm.xlu0 %418, %v190_v14   ;;  %v184_v16 = vld [vmem:[%s644_s4] sm:$0xff]  ;;  %v45_v17 = vld [vmem:[%s643_s3 + $0x10] sm:$0xff]  ;;  %v185_v20 = vld [vmem:[%s644_s4 + $0x8] sm:$0xff]  ;;  %s374_s14 = sshll.u32 %s448_s13, 4  ;;  %s450_s18 = smov 8   ;;  %s375_s14 = int_to_ptr.vmem [resolvable:$true] %s374_s14 }
   0xd   :  { %209 = vperm.xlu2 %420, %v187_v15   ;;  %v39_v18 = vld [vmem:[%s642_s2 + $0x30] sm:$0xff]  ;;  %v253_v22 = vld [vmem:[%s646_s6 + $0x8] sm:$0xff]  ;;  %v46_v23 = vld [vmem:[%s643_s3 + $0x18] sm:$0xff] }
   0xe   :  { %389 = vmatmul.msk.f32.gmra.mxu0 %vm53_vm0, %v44_v11  ;;  %395 = vmatmul.msk.f32.gmra.mxu3 %vm53_vm0, %v50_v12  ;;  %v35_v19 = vld [vmem:[%s642_s2 + $0x10] sm:$0xff]  ;;  %v40_v24 = vld [vmem:[%s642_s2 + $0x38] sm:$0xff]  ;;  %v325_v28 = vld [vmem:[%s648_s8 + $0x8] sm:$0xff] }
   0xf   :  { %397 = vmatmul.msk.f32.gmra.mxu1 %vm53_vm0, %v34_v13  ;;  %v186_v21 = vld [vmem:[%s644_s4 + $0x10] sm:$0xff]  ;;  %v36_v25 = vld [vmem:[%s642_s2 + $0x18] sm:$0xff]  ;;  %v47_v29 = vld [vmem:[%s643_s3 + $0x20] sm:$0xff] }
  0x10   :  { %v254_v26 = vld [vmem:[%s646_s6 + $0x10] sm:$0xff]  ;;  %v255_v27 = vld [vmem:[%s646_s6 + $0x18] sm:$0xff]  ;;  %v37_v30 = vld [vmem:[%s642_s2 + $0x20] sm:$0xff] }
  0x11   :  { %v324_v31 = vld [vmem:[%s648_s8] sm:$0xff]  ;;  %v48_v33 = vld [vmem:[%s643_s3 + $0x28] sm:$0xff] }
  0x12   :  { %v252_v32 = vld [vmem:[%s646_s6] sm:$0xff]  ;;  %v38_v34 = vld [vmem:[%s642_s2 + $0x28] sm:$0xff] }
  0x14   :  { %194 = vperm.xlu1 %419, %v184_v16   ;;  %199 = vperm.xlu0 %418, %v185_v20   ;;  %v249_v20 = vld [vmem:[%s645_s5 + $0x8] sm:$0xff] }
  0x15   :  { %204 = vperm.xlu2 %420, %v186_v21   ;;  %v250_v21 = vld [vmem:[%s645_s5 + $0x10] sm:$0xff] }
  0x16   :  { %390 = vmatmul.msk.f32.gmra.mxu0 %vm53_vm0, %v45_v17  ;;  %402 = vmatmul.msk.f32.vlgmr.msrb.gmra.mxu3 %vm53_vm0, %v39_v18 }
  0x17   :  { %398 = vmatmul.msk.f32.gmra.mxu1 %vm53_vm0, %v35_v19  ;;  %v248_v19 = vld [vmem:[%s645_s5] sm:$0xff] }
  0x1c   :  { %263 = vperm.xlu1 %419, %v253_v22   ;;  %268 = vperm.xlu0 %418, %v254_v26   ;;  %v251_v22 = vld [vmem:[%s645_s5 + $0x18] sm:$0xff] }
  0x1d   :  { %273 = vperm.xlu2 %420, %v255_v27  }
  0x1e   :  { %391 = vmatmul.msk.f32.gmra.mxu0 %vm53_vm0, %v46_v23  ;;  %403 = vmatmul.msk.f32.gmra.mxu3 %vm53_vm0, %v40_v24 }
  0x1f   :  { %399 = vmatmul.msk.f32.gmra.mxu1 %vm53_vm0, %v36_v25 }
  0x24   :  { %333 = vperm.xlu1 %419, %v325_v28   ;;  %328 = vperm.xlu0 %418, %v324_v31  }
  0x25   :  { %258 = vperm.xlu2 %420, %v252_v32  }
  0x26   :  { %392 = vmatmul.msk.f32.gmra.mxu0 %vm53_vm0, %v47_v29 }
  0x27   :  { %400 = vmatmul.msk.f32.gmra.mxu1 %vm53_vm0, %v37_v30 }
  0x2e   :  { %393 = vmatmul.msk.f32.gmra.mxu0 %vm53_vm0, %v48_v33 }
  0x2f   :  { %401 = vmatmul.msk.f32.gmra.mxu1 %vm53_vm0, %v38_v34 }
  0x67   :  { %v210_v56 = vpop.permute.xlu2 %209 }
  0x6f   :  { %v205_v4 = vpop.permute.xlu2 %204 }
  0x75   :  { %v230_v43 = vpop.permute.xlu0 %229 }
  0x76   :  { %v220_v47 = vpop.permute.xlu1 %219 }
  0x77   :  { %v274_v26 = vpop.permute.xlu2 %273 }
  0x7e   :  { %v225_v51 = vpop.permute.xlu0 %224  ;;  %v215_v59 = vpop.permute.xlu1 %214 }
  0x7f   :  { %v259_v34 = vpop.permute.xlu2 %258 }
  0x83   :  { %v95_v35 = vpop.f32.mrf.mxu0 }
  0x84   :  { %v160_v36 = vpop.f32.mrf.mxu1 }
  0x85   :  { %v161_v9 = vadd.f32 %v160_v36, %v95_v35 }
  0x86   :  { %v200_v8 = vpop.permute.xlu0 %199  ;;  %v195_v12 = vpop.permute.xlu1 %194 }
  0x87   :  { %v232_v15 = vadd.f32 %v195_v12, %v161_v9 }
  0x89   :  { %v113_v37 = vpop.f32.mrf.mxu3  ;;  %v240_v18 = vmax.f32 %v232_v15, 0.0 }
  0x8b   :  { %v98_v38 = vpop.f32.mrf.mxu0 }
  0x8c   :  { %v163_v39 = vpop.f32.mrf.mxu1 }
  0x8d   :  { %v164_v5 = vadd.f32 %v163_v39, %v98_v38  ;;  %v322_v39 = vld [vmem:[%s647_s7] sm:$0xff] }
  0x8e   :  { %v269_v27 = vpop.permute.xlu0 %268  ;;  %v264_v31 = vpop.permute.xlu1 %263 }
  0x8f   :  { %v233_v13 = vadd.f32 %v200_v8, %v164_v5 }
  0x91   :  { %v116_v40 = vpop.f32.mrf.mxu3  ;;  %v241_v17 = vmax.f32 %v233_v13, 0.0 }
  0x93   :  { %v101_v41 = vpop.f32.mrf.mxu0 }
  0x94   :  { %v166_v42 = vpop.f32.mrf.mxu1 }
  0x95   :  { %v167_v1 = vadd.f32 %v166_v42, %v101_v41 }
  0x96   :  { %v329_v41 = vpop.permute.xlu0 %328 }
  0x97   :  { %v234_v10 = vadd.f32 %v205_v4, %v167_v1 }
  0x99   :  { %v178_v44 = vpop.f32.mrf.mxu3  ;;  %v242_v16 = vmax.f32 %v234_v10, 0.0 }
  0x9a   :  { %v179_v48 = vadd.f32 %v178_v44, %v113_v37 }
  0x9b   :  { %v104_v45 = vpop.f32.mrf.mxu0 }
  0x9c   :  { %v169_v46 = vpop.f32.mrf.mxu1  ;;  %v238_v55 = vadd.f32 %v225_v51, %v179_v48 }
  0x9d   :  { %v170_v63 = vadd.f32 %v169_v46, %v104_v45  ;;  %v334_v45 = vpop.permute.xlu1 %333 }
  0x9e   :  { %v246_v58 = vmax.f32 %v238_v55, 0.0 }
  0x9f   :  { %v235_v7 = vadd.f32 %v210_v56, %v170_v63 }
  0xa1   :  { %v181_v49 = vpop.f32.mrf.mxu3  ;;  %v243_v14 = vmax.f32 %v235_v7, 0.0 }
  0xa2   :  { %v182_v50 = vadd.f32 %v181_v49, %v116_v40  ;;  %v323_v40 = vld [vmem:[%s647_s7 + $0x8] sm:$0xff]  ;;  %s449_s7 = smov 128  }
  0xa3   :  { %v107_v52 = vpop.f32.mrf.mxu0 }
  0xa4   :  { %v172_v53 = vpop.f32.mrf.mxu1  ;;  %v239_v54 = vadd.f32 %v230_v43, %v182_v50 }
  0xa5   :  { %v173_v60 = vadd.f32 %v172_v53, %v107_v52 }
  0xa6   :  { %v247_v57 = vmax.f32 %v239_v54, 0.0 }
  0xa7   :  { %v236_v3 = vadd.f32 %v215_v59, %v173_v60 }
  0xa8   :  { %297 = vmatpush.msra.mxu2 %v247_v57 }
  0xa9   :  { %v244_v11 = vmax.f32 %v236_v3, 0.0 }
  0xaa   :  { %298 = vmatpush.msra.mxu2 %v246_v58 }
  0xab   :  { %v110_v61 = vpop.f32.mrf.mxu0 }
  0xac   :  { %v175_v62 = vpop.f32.mrf.mxu1 }
  0xad   :  { %v176_v0 = vadd.f32 %v175_v62, %v110_v61 }
  0xaf   :  { %v237_v2 = vadd.f32 %v220_v47, %v176_v0 }
  0xb1   :  { %v245_v6 = vmax.f32 %v237_v2, 0.0 }
  0xb3   :  { %299 = vmatpush.msra.mxu2 %v245_v6 }
  0xb5   :  { %300 = vmatpush.msra.mxu2 %v244_v11 }
  0xb7   :  { %301 = vmatpush.msra.mxu2 %v243_v14 }
  0xb9   :  { %302 = vmatpush.msra.mxu2 %v242_v16 }
  0xbb   :  { %303 = vmatpush.msra.mxu2 %v241_v17 }
  0xbd   :  { %304 = vmatpush.msra.mxu2 %v240_v18 }
  0xbe   :  { %404 = vmatmul.msk.f32.vlgmr.msra.gmra.mxu2 %vm276_vm1, %v248_v19 }
  0xc6   :  { %405 = vmatmul.msk.f32.gmra.mxu2 %vm276_vm1, %v249_v20 }
  0xce   :  { %406 = vmatmul.msk.f32.gmra.mxu2 %vm276_vm1, %v250_v21 }
  0xd6   :  { %407 = vmatmul.msk.f32.gmra.mxu2 %vm276_vm1, %v251_v22 }
 0x141   :  { %v306_v23 = vpop.f32.mrf.mxu2 }
 0x142   :  { %v307_v35 = vadd.f32 %v306_v23, %v259_v34 }
 0x144   :  { %v318_v38 = vmax.f32 %v307_v35, 0.0 }
 0x149   :  { %v309_v24 = vpop.f32.mrf.mxu2 }
 0x14a   :  { %v310_v32 = vadd.f32 %v309_v24, %v264_v31 }
 0x14c   :  { %v319_v37 = vmax.f32 %v310_v32, 0.0 }
 0x151   :  { %v312_v25 = vpop.f32.mrf.mxu2 }
 0x152   :  { %v313_v29 = vadd.f32 %v312_v25, %v269_v27 }
 0x154   :  { %v320_v36 = vmax.f32 %v313_v29, 0.0 }
 0x159   :  { %v315_v28 = vpop.f32.mrf.mxu2 }
 0x15a   :  { %v316_v30 = vadd.f32 %v315_v28, %v274_v26 }
 0x15c   :  { %v321_v33 = vmax.f32 %v316_v30, 0.0 }
 0x15e   :  { %355 = vmatpush.msra.mxu3 %v321_v33 }
 0x160   :  { %356 = vmatpush.msra.mxu3 %v320_v36 }
 0x162   :  { %357 = vmatpush.msra.mxu3 %v319_v37 }
 0x164   :  { %358 = vmatpush.msra.mxu3 %v318_v38 }
 0x165   :  { %408 = vmatmul.msk.f32.vlgmr.msra.gmra.mxu3 %vm336_vm2, %v322_v39 }
 0x16d   :  { %409 = vmatmul.msk.f32.gmra.mxu3 %vm336_vm2, %v323_v40 }
 0x1e8   :  { %v360_v42 = vpop.f32.mrf.mxu3 }
 0x1e9   :  { %v361_v43 = vadd.f32 %v360_v42, %v329_v41 }
 0x1eb   :  { %v366_v44 = vmax.f32 %v361_v43, 0.0 }
 0x1ed   :  { %368 = vst [vmem:[#allocation2] sm:$0xff] %v366_v44 }
 0x1f0   :  { %v363_v46 = vpop.f32.mrf.mxu3 }
 0x1f1   :  { %v364_v47 = vadd.f32 %v363_v46, %v334_v45 }
 0x1f3   :  { %v367_v48 = vmax.f32 %v364_v47, 0.0 }
 0x1f5   :  { %369 = vst [vmem:[#allocation2 + $0x8] sm:$0xff] %v367_v48 }
 0x1f6   :  { %382 = dma.vmem_to_hbm [thread:$0]  %s375_s14, 256, %s377_s17, [#allocation3], %s449_s7, %s449_s7, %s450_s18  }
 0x1f7   :  { %445 = dma.done.wait [#allocation3], 256  }
 0x1f8   :  { %446 = vsyncadd [#allocation3], 4294967040 }
 0x1f9   :  { %387 = vsyncpa [#allocation3], 1 }

</bundles_post_ra>
